<compile_context>
chip_gen: v6e
topology: v6e:2x2x1
jax: 0.10.0
libtpu: 0.0.40
codegen_flags: <defaults>
</compile_context>

<pallas_src>
import functools
import math

import numpy as np
import jax
import jax.numpy as jnp
from jax.experimental import pallas as pl
from jax.experimental.pallas import tpu as pltpu


def _meanpool_conv_kernel(x_ref, w_ref, b_ref, o_ref, *, k, pad, c2, Hp, Wp):
    # Block shapes:
    #   x_ref : (Bt, 2, Hp, Wp, 2*Cin)   h-phase pair on a leading (untiled) axis;
    #                                    lanes = [w-even channels | w-odd channels]
    #   w_ref : (k*k*2*Cin, Cout_pad)    0.25-scaled, duplicated, tap-major flattened
    #   b_ref : (1, Cout_pad)            f32
    #   o_ref : (Bt, Hp*Wp, Cout_pad)    lane-dense (Cout_pad is a 128 multiple)
    Bt = x_ref.shape[0]
    Cp = o_ref.shape[-1]

    # h-phase pair sum on the VPU (leading-axis slices: no relayout).  The w-phase
    # pair sum and the /4 are folded into w_ref so they ride the MXU for free.
    xt = x_ref[...]
    s = xt[:, 0] + xt[:, 1]                               # (Bt, Hp, Wp, c2)

    # "same" padding as a register concat with zeros (no masked halo stores).
    if pad > 0:
        zw = jnp.zeros((Bt, Hp, pad, c2), dtype=s.dtype)
        s = jnp.concatenate([zw, s, zw], axis=2)          # (Bt, Hp, Wp+2p, c2)
        zh = jnp.zeros((Bt, pad, Wp + 2 * pad, c2), dtype=s.dtype)
        s = jnp.concatenate([zh, s, zh], axis=1)          # (Bt, Hp+2p, Wp+2p, c2)

    # im2col: the tap shifts are folded into the patch build (the H shift is a
    # free leading-axis slice; the W shift's sublane relayout is the single
    # inherent pass over the slab — no per-j materialized slab copies).
    taps = [s[:, i:i + Hp, j:j + Wp, :] for i in range(k) for j in range(k)]
    patches = taps[0] if len(taps) == 1 else jnp.concatenate(taps, axis=-1)
    lhs = patches.reshape(Bt * Hp * Wp, k * k * c2)       # (M, K)

    # One fat MXU matmul (K = k*k*2*Cin) with f32 accumulation, then bias.
    acc = jnp.dot(lhs, w_ref[...], preferred_element_type=jnp.float32)
    acc = acc + b_ref[...]
    o_ref[...] = acc.reshape(Bt, Hp * Wp, Cp).astype(o_ref.dtype)


def _round_up(v, m):
    return (v + m - 1) // m * m


def _tile_bytes(*dims):
    """Conservative f32 VMEM bytes for a value: last two dims padded to (8, 128)."""
    lead = 1
    for d in dims[:-2]:
        lead *= int(d)
    return lead * _round_up(int(dims[-2]), 8) * _round_up(int(dims[-1]), 128) * 4


def _vmem_footprint(Bt, Hp, Wp, Cin, Cout, k):
    c2 = 2 * Cin
    K = k * k * c2
    Cp = _round_up(Cout, 128)
    pad = (k - 1) // 2
    Hpp, Wpp = Hp + 2 * pad, Wp + 2 * pad
    M = Bt * Hp * Wp
    dbl = (_tile_bytes(Bt, 2, Hp, Wp, c2)        # input block
           + _tile_bytes(K, Cp)                  # weights
           + _tile_bytes(1, Cp)                  # bias
           + _tile_bytes(Bt, Hp * Wp, Cp))       # output block
    tmp = (_tile_bytes(Bt, Hp, Wp, c2)           # h-summed slab
           + _tile_bytes(Bt, Hpp, Wpp, c2)       # padded slab
           + _tile_bytes(M, K)                   # im2col patch matrix
           + _tile_bytes(M, Cp))                 # matmul result before the store
    return 2 * dbl + int(1.5 * tmp)              # blocks double-buffered; relayout slack


def _vmem_budgets():
    """(tile-picker budget, vmem_limit_bytes cap) sized per TPU generation."""
    cap = 64 << 20
    try:
        cap = int(getattr(pltpu.get_tpu_info(), "vmem_capacity_bytes", cap))
    except Exception:
        pass
    if cap >= (96 << 20):            # v5e / v6e: 128 MiB physical VMEM
        return 90 << 20, 112 << 20
    return 36 << 20, 48 << 20        # v7x-class: 64 MiB physical VMEM


def _pick_batch_tile(B, Hp, Wp, Cin, Cout, k, budget_bytes):
    # Guarantee >= min(B, 4) grid steps: keeps the software pipeline fed and lets
    # the "parallel" batch axis shard across v7x's two TensorCores.
    max_bt = max(1, B // min(B, 4))
    for bt in range(max_bt, 0, -1):
        if B % bt:
            continue
        if _vmem_footprint(bt, Hp, Wp, Cin, Cout, k) <= budget_bytes:
            return bt
    # TODO(synk): tile H with a (k-1) halo when even a single image overflows.
    return 1


def mean_pool_conv(x_nchw, w_hwio, bias, *, ksize):
    """MeanPoolConv forward. x is NCHW, w is HWIO (kh, kw, Cin, Cout), bias (Cout,)."""
    B, Cin, H, W = x_nchw.shape
    kh, kw, wcin, Cout = w_hwio.shape
    assert kh == kw == ksize and wcin == Cin
    assert ksize % 2 == 1, "even kernel_size needs asymmetric 'same' padding (unsupported)"
    assert H % 2 == 0 and W % 2 == 0, "spatial dims must be even for 2x2 mean pooling"
    Hp, Wp = H // 2, W // 2
    pad = (ksize - 1) // 2
    c2 = 2 * Cin
    K = ksize * ksize * c2
    Cp = _round_up(Cout, 128)
    dt = x_nchw.dtype
    itemsize = jnp.dtype(dt).itemsize

    # One HBM pass: NCHW -> (B, h-phase, Hp, Wp, w-phase, Cin); the trailing
    # reshape of the contiguous result is free.  The h-phase lands on a leading
    # (untiled) axis so the in-kernel pooling add needs no relayout.
    xr = x_nchw.reshape(B, Cin, Hp, 2, Wp, 2)
    x_in = jnp.transpose(xr, (0, 3, 2, 4, 5, 1)).reshape(B, 2, Hp, Wp, c2)

    # Fold the 2x2-mean /4 and the w-phase pair sum into the conv weight, flatten
    # it tap-major to match the kernel's im2col lane order, and pad Cout to a
    # multiple of 128 so the kernel's result stores are lane-dense.
    w2 = (0.25 * jnp.concatenate([w_hwio, w_hwio], axis=2)).reshape(K, Cout)
    w_p = jnp.zeros((K, Cp), dt).at[:, :Cout].set(w2.astype(dt))
    b_p = jnp.zeros((1, Cp), jnp.float32).at[:, :Cout].set(
        bias.reshape(1, Cout).astype(jnp.float32))

    budget, limit_cap = _vmem_budgets()
    Bt = _pick_batch_tile(B, Hp, Wp, Cin, Cout, ksize, budget)
    fp = _vmem_footprint(Bt, Hp, Wp, Cin, Cout, ksize)
    vmem_limit = int(min(limit_cap, max(32 << 20, 2 * fp)))

    cost = pl.CostEstimate(
        flops=2 * B * Hp * Wp * K * Cp,
        transcendentals=0,
        bytes_accessed=(B * 2 * Hp * Wp * c2 * itemsize        # input read
                        + B * Hp * Wp * Cp * itemsize          # output write
                        + (K + 1) * Cp * 4))                   # weights + bias

    kernel = functools.partial(_meanpool_conv_kernel, k=ksize, pad=pad,
                               c2=c2, Hp=Hp, Wp=Wp)

    out = pl.pallas_call(
        kernel,
        out_shape=jax.ShapeDtypeStruct((B, Hp * Wp, Cp), dt),
        grid_spec=pltpu.PrefetchScalarGridSpec(
            num_scalar_prefetch=0,
            grid=(B // Bt,),
            in_specs=[
                pl.BlockSpec((Bt, 2, Hp, Wp, c2), lambda b: (b, 0, 0, 0, 0)),
                pl.BlockSpec((K, Cp), lambda b: (0, 0)),
                pl.BlockSpec((1, Cp), lambda b: (0, 0)),
            ],
            out_specs=pl.BlockSpec((Bt, Hp * Wp, Cp), lambda b: (b, 0, 0)),
        ),
        compiler_params=pltpu.CompilerParams(
            dimension_semantics=("parallel",),       # batch tiles are independent
            vmem_limit_bytes=vmem_limit),
        cost_estimate=cost,
    )(x_in, w_p, b_p)

    # Slice off the Cout padding and restore NCHW; XLA fuses slice + transpose.
    out = out.reshape(B, Hp, Wp, Cp)[..., :Cout]
    return jnp.transpose(out, (0, 3, 1, 2))


if __name__ == "__main__":
    key = jax.random.PRNGKey(0)
    B, Cin, H, W = 2, 4, 16, 16
    Cout, k = 8, 3

    kx, kw, kb = jax.random.split(key, 3)
    x = jax.random.normal(kx, (B, Cin, H, W), dtype=jnp.float32)

    # Deterministic parameter init (same bounds as PyTorch Conv2d default).
    fan_in = Cin * k * k
    bound = 1.0 / math.sqrt(fan_in)
    w_hwio = jax.random.uniform(kw, (k, k, Cin, Cout), jnp.float32, -bound, bound)
    bias = jax.random.uniform(kb, (Cout,), jnp.float32, -bound, bound)

    out = jax.block_until_ready(mean_pool_conv(x, w_hwio, bias, ksize=k))

    # Pure-JAX reference (matches the torch module semantics).
    pooled = (x[:, :, ::2, ::2] + x[:, :, 1::2, ::2]
              + x[:, :, ::2, 1::2] + x[:, :, 1::2, 1::2]) / 4.0
    w_oihw = jnp.transpose(w_hwio, (3, 2, 0, 1))
    ref = jax.lax.conv_general_dilated(
        pooled, w_oihw, window_strides=(1, 1), padding=((1, 1), (1, 1)),
        dimension_numbers=("NCHW", "OIHW", "NCHW"))
    ref = ref + bias[None, :, None, None]

    assert out.shape == ref.shape == (B, Cout, H // 2, W // 2), out.shape
    np.testing.assert_allclose(np.asarray(out), np.asarray(ref),
                               atol=5e-2, rtol=5e-2)
    print("KERNEL_OK")
</pallas_src>

<mosaic_0001>
module attributes {stable_mosaic.version = 11 : i64} {
  func.func @_meanpool_conv_kernel(%arg0: i32, %arg1: memref<1x2x8x8x8xf32, #tpu.memory_space<vmem>>, %arg2: memref<72x128xf32, #tpu.memory_space<vmem>>, %arg3: memref<1x128xf32, #tpu.memory_space<vmem>>, %arg4: memref<1x64x128xf32, #tpu.memory_space<vmem>>) attributes {dimension_semantics = [#tpu.dimension_semantics<parallel>], iteration_bounds = array<i64: 2>, scalar_prefetch = 0 : i64, scratch_operands = 0 : i64, tpu.core_type = #tpu.core_type<tc>, window_params = [{transform_indices = @transform_0, window_bounds = array<i64: 1, 2, 8, 8, 8>}, {pipeline_mode = #tpu.pipeline_mode<synchronous>, transform_indices = @transform_1, window_bounds = array<i64: 72, 128>}, {pipeline_mode = #tpu.pipeline_mode<synchronous>, transform_indices = @transform_2, window_bounds = array<i64: 1, 128>}, {transform_indices = @transform_3, window_bounds = array<i64: 1, 64, 128>}]} {
    %c0 = arith.constant 0 : index
    %c0_0 = arith.constant 0 : index
    %c0_1 = arith.constant 0 : index
    %c0_2 = arith.constant 0 : index
    %c0_3 = arith.constant 0 : index
    %0 = vector.load %arg1[%c0, %c0_0, %c0_1, %c0_2, %c0_3] : memref<1x2x8x8x8xf32, #tpu.memory_space<vmem>>, vector<1x2x8x8x8xf32>
    %1 = vector.extract_strided_slice %0 {offsets = [0, 0, 0, 0, 0], sizes = [1, 1, 8, 8, 8], strides = [1, 1, 1, 1, 1]} : vector<1x2x8x8x8xf32> to vector<1x1x8x8x8xf32>
    %2 = vector.shape_cast %1 : vector<1x1x8x8x8xf32> to vector<1x8x8x8xf32>
    %3 = vector.extract_strided_slice %0 {offsets = [0, 1, 0, 0, 0], sizes = [1, 1, 8, 8, 8], strides = [1, 1, 1, 1, 1]} : vector<1x2x8x8x8xf32> to vector<1x1x8x8x8xf32>
    %4 = vector.shape_cast %3 : vector<1x1x8x8x8xf32> to vector<1x8x8x8xf32>
    %5 = arith.addf %2, %4 : vector<1x8x8x8xf32>
    %cst = arith.constant 0.000000e+00 : f32
    %6 = vector.broadcast %cst : f32 to vector<1x8x1x8xf32>
    %7 = tpu.concatenate %6, %5, %6 in 2 : vector<1x8x1x8xf32>, vector<1x8x8x8xf32>, vector<1x8x1x8xf32> -> vector<1x8x10x8xf32>
    %cst_4 = arith.constant 0.000000e+00 : f32
    %8 = vector.broadcast %cst_4 : f32 to vector<1x1x10x8xf32>
    %9 = tpu.concatenate %8, %7, %8 in 1 : vector<1x1x10x8xf32>, vector<1x8x10x8xf32>, vector<1x1x10x8xf32> -> vector<1x10x10x8xf32>
    %10 = vector.extract_strided_slice %9 {offsets = [0, 0, 0, 0], sizes = [1, 8, 8, 8], strides = [1, 1, 1, 1]} : vector<1x10x10x8xf32> to vector<1x8x8x8xf32>
    %11 = vector.extract_strided_slice %9 {offsets = [0, 0, 1, 0], sizes = [1, 8, 8, 8], strides = [1, 1, 1, 1]} : vector<1x10x10x8xf32> to vector<1x8x8x8xf32>
    %12 = vector.extract_strided_slice %9 {offsets = [0, 0, 2, 0], sizes = [1, 8, 8, 8], strides = [1, 1, 1, 1]} : vector<1x10x10x8xf32> to vector<1x8x8x8xf32>
    %13 = vector.extract_strided_slice %9 {offsets = [0, 1, 0, 0], sizes = [1, 8, 8, 8], strides = [1, 1, 1, 1]} : vector<1x10x10x8xf32> to vector<1x8x8x8xf32>
    %14 = vector.extract_strided_slice %9 {offsets = [0, 1, 1, 0], sizes = [1, 8, 8, 8], strides = [1, 1, 1, 1]} : vector<1x10x10x8xf32> to vector<1x8x8x8xf32>
    %15 = vector.extract_strided_slice %9 {offsets = [0, 1, 2, 0], sizes = [1, 8, 8, 8], strides = [1, 1, 1, 1]} : vector<1x10x10x8xf32> to vector<1x8x8x8xf32>
    %16 = vector.extract_strided_slice %9 {offsets = [0, 2, 0, 0], sizes = [1, 8, 8, 8], strides = [1, 1, 1, 1]} : vector<1x10x10x8xf32> to vector<1x8x8x8xf32>
    %17 = vector.extract_strided_slice %9 {offsets = [0, 2, 1, 0], sizes = [1, 8, 8, 8], strides = [1, 1, 1, 1]} : vector<1x10x10x8xf32> to vector<1x8x8x8xf32>
    %18 = vector.extract_strided_slice %9 {offsets = [0, 2, 2, 0], sizes = [1, 8, 8, 8], strides = [1, 1, 1, 1]} : vector<1x10x10x8xf32> to vector<1x8x8x8xf32>
    %19 = tpu.concatenate %10, %11, %12, %13, %14, %15, %16, %17, %18 in 3 : vector<1x8x8x8xf32>, vector<1x8x8x8xf32>, vector<1x8x8x8xf32>, vector<1x8x8x8xf32>, vector<1x8x8x8xf32>, vector<1x8x8x8xf32>, vector<1x8x8x8xf32>, vector<1x8x8x8xf32>, vector<1x8x8x8xf32> -> vector<1x8x8x72xf32>
    %20 = vector.shape_cast %19 : vector<1x8x8x72xf32> to vector<64x72xf32>
    %c0_5 = arith.constant 0 : index
    %c0_6 = arith.constant 0 : index
    %21 = vector.load %arg2[%c0_5, %c0_6] : memref<72x128xf32, #tpu.memory_space<vmem>>, vector<72x128xf32>
    %cst_7 = arith.constant dense<0.000000e+00> : vector<64x128xf32>
    %22 = tpu.matmul %20, %21, %cst_7 {dimension_numbers = #tpu.dot_dimension_numbers<[1], [0], [0], [1], [0, 0, 1, 1], [], []>} : vector<64x72xf32>, vector<72x128xf32>, vector<64x128xf32> -> vector<64x128xf32>
    %c0_8 = arith.constant 0 : index
    %c0_9 = arith.constant 0 : index
    %23 = vector.load %arg3[%c0_8, %c0_9] : memref<1x128xf32, #tpu.memory_space<vmem>>, vector<1x128xf32>
    %24 = vector.broadcast %23 : vector<1x128xf32> to vector<64x128xf32>
    %25 = arith.addf %22, %24 : vector<64x128xf32>
    %26 = vector.shape_cast %25 : vector<64x128xf32> to vector<1x64x128xf32>
    %c0_10 = arith.constant 0 : index
    %c0_11 = arith.constant 0 : index
    %c0_12 = arith.constant 0 : index
    %27 = vector.load %arg4[%c0_10, %c0_11, %c0_12] : memref<1x64x128xf32, #tpu.memory_space<vmem>>, vector<1x64x128xf32>
    tpu.vector_store %arg4[%c0_10, %c0_11, %c0_12], %26 {strides = array<i32>} : memref<1x64x128xf32, #tpu.memory_space<vmem>>, vector<1x64x128xf32>,
    return
  }
  func.func @transform_0(%arg0: i32) -> (i32, i32, i32, i32, i32) {
    %c0_i32 = arith.constant 0 : i32
    %c0_i32_0 = arith.constant 0 : i32
    %c0_i32_1 = arith.constant 0 : i32
    %c0_i32_2 = arith.constant 0 : i32
    %c0_i32_3 = arith.constant 0 : i32
    return %arg0, %c0_i32, %c0_i32_0, %c0_i32_1, %c0_i32_2 : i32, i32, i32, i32, i32
  }
  func.func @transform_1(%arg0: i32) -> (i32, i32) {
    %c0_i32 = arith.constant 0 : i32
    %c0_i32_0 = arith.constant 0 : i32
    %c0_i32_1 = arith.constant 0 : i32
    return %c0_i32, %c0_i32_0 : i32, i32
  }
  func.func @transform_2(%arg0: i32) -> (i32, i32) {
    %c0_i32 = arith.constant 0 : i32
    %c0_i32_0 = arith.constant 0 : i32
    %c0_i32_1 = arith.constant 0 : i32
    return %c0_i32, %c0_i32_0 : i32, i32
  }
  func.func @transform_3(%arg0: i32) -> (i32, i32, i32) {
    %c0_i32 = arith.constant 0 : i32
    %c0_i32_0 = arith.constant 0 : i32
    %c0_i32_1 = arith.constant 0 : i32
    return %arg0, %c0_i32, %c0_i32_0 : i32, i32, i32
  }
}

</mosaic_0001>

<bundles_post_ra>
// kernel: tpu_custom_call.1
= control target key start
LH: loop header
LB: loop body
LE: loop exit
PB: predicated region body
PF: predicated region fallthrough
CT: control target
= control target key end

     0   :  { %8 = vsyncpa [#allocation3], 0  ;;  %s1712_s0 = inlined_call_operand.hbm [shape: f32[2,2,8,8,8], index: 0, kind: input, shape index: {}]   ;;  %s1713_s1 = inlined_call_operand.hbm [shape: f32[72,128], index: 1, kind: input, shape index: {}]   ;;  %s1714_s2 = inlined_call_operand.vmem [shape: f32[1,128], index: 2, kind: input, shape index: {}]   ;;  %s1715_s3 = inlined_call_operand.hbm [shape: f32[2,64,128], index: 3, kind: output, shape index: {}]  }
   0x1   :  { %10 = vsyncpa [#allocation3 + $0x1], 0 }
   0x2   :  { %11 = vsyncpa [#allocation6], 0 }
   0x3   :  { %12 = vsyncpa [#allocation4], 0 }
   0x4   :  { %14 = vsyncpa [#allocation4 + $0x1], 0  ;;  %s1175_s12 = smov 0   ;;  %s1177_s13 = smov 0  }
   0x5   :  { %s1179_s14 = smov 0   ;;  %s1181_s15 = smov 0  }
   0x6 LB: > { %s1196_s16 = sadd.s32 4294967295, %s1138_s15   ;;  %s855_s17 = sadd.s32 4294967294, %s1138_s15   ;;  %s1138_s15 = sphi %s1181_s15, %s1737_s15   ;;  %s1134_s14 = sphi %s1179_s14, %s1736_s14   ;;  %s1130_s13 = sphi %s1177_s13, %s1735_s13   ;;  %s1126_s12 = sphi %s1175_s12, %s1734_s12  }
   0x7   : > { %p40_p0 = scmp.ne.s32.totalorder %s1130_s13, %s1126_s12  ;;  %p1716_p1 = scmp.eq.s32.totalorder %s1196_s16, 0 }
   0x8   : > { %p112_p3 = scmp.eq.s32.totalorder %s855_s17, 1  ;;  %p856_p5 = scmp.ge.s32.totalorder %s1138_s15, 1 }
   0x9   : > { %p1205_p4 = por %p1716_p1, %p40_p0  ;;  %p119_p7 = scmp.lt.s32.totalorder %s1138_s15, 3 }
   0xa   : > { %p1210_p6 = por %p112_p3, %p40_p0  ;;  %s1140_s21 = smov [#allocation5]  }
   0xb   : > { %s1720_s18 = scalar_select %p1205_p4, 1, 0 }
   0xc   : > { %s1721_s19 = scalar_select %p1210_p6, 1, 0 }
   0xd   : > { %p1215_p8 = pnand %p856_p5, %p119_p7  ;;  %s131_s22 = sshll.u32 %s1140_s21, 4  ;;  %s132_s22 = int_to_ptr.vmem [resolvable:$true] %s131_s22 }
   0xe   : > { %s1229_s24 = sadd.s32 1, %s1138_s15   ;;  %s27_s25 = sadd.s32 1, %s1134_s14 }
   0xf   : > { %s1722_s20 = scalar_select %p1215_p8, 1, 0 }
  0x10   : > { %p955_p9 = pneg %p1215_p8  ;;  %s24_s26 = ssub.s32 %s1138_s15, %s1229_s24 }
  0x11   : > { %s1027_s27 = scalar_lea.vmem %s132_s22, 1152  ;;  %p1035_p5 = scmp.lt.s32.totalorder %s132_s22, %s132_s22 }
  0x12   : > { %p1224_p11 = pnand %p955_p9, %p1716_p1  ;;  %p1028_p13 = scmp.ne.s32.totalorder %s132_s22, %s1027_s27 }
  0x13   : > { %p1036_p7 = scmp.lt.s32.totalorder %s1027_s27, %s1027_s27 }
  0x14   : > { %p1018_p12 = pneg %p1224_p11 }
  0x15   : > { %p1037_p10 = por %p1036_p7, %p1035_p5 }
  0x16   : > { %p1030_p0 = pnand %p1028_p13, %p1018_p12 }
  0x18   : > { %p1031_p3 = pneg %p1030_p0 }
  0x1a   : > { %p1038_p2 = pnand %p1037_p10, %p1031_p3 }
  0x1c   : > { %1041 = shalt.err (!%p1038_p2)
}
  0x1d   : > { %s1141_s28 = smov 128   ;;  %s1142_s29 = smov 8  }
  0x1e   : > { %958 = dma.hbm_to_vmem [thread:$0]  (!%p1224_p11), %s1713_s1, 1152, %s132_s22, [#allocation6], %s1141_s28, %s1141_s28, %s1142_s29  }
  0x1f   : > { %p25_p2 = scmp.eq.s32.totalorder %s24_s26, 0  ;;  %p34_p9 = scmp.ne.s32.totalorder %s1134_s14, %s1130_s13 }
  0x20   : > { %p35_p10 = scmp.eq.s32.totalorder %s1138_s15, 0  ;;  %p968_p12 = scmp.lt.s32.totalorder %s1138_s15, 2 }
  0x21   : > { %s1249_s5 = scalar_select %p25_p2, %s1134_s14, %s27_s25  }
  0x22   : > { %p36_p13 = por %p35_p10, %p34_p9  ;;  %p1724_p0 = scmp.eq.s32.totalorder %s1196_s16, 1 }
  0x23   : > { %s148_s7 = sand.u32 1, %s1134_s14   ;;  %s880_s8 = sshll.u32 %s1138_s15, 11 }
  0x24   : > { %p1253_p3 = por %p1724_p0, %p34_p9  ;;  %s859_s9 = sshll.u32 %s148_s7, 7 }
  0x25   : > { %s1262_s17 = scalar_lea.hbm %s1712_s0, %s880_s8  ;;  %s152_s21 = scalar_lea.vmem [#allocation2], %s859_s9 }
  0x26   : > { %s1725_s6 = scalar_select %p1253_p3, 1, 0 }
  0x27   : > { %s159_s22 = sshll.u32 %s152_s21, 4  ;;  %p1264_p11 = pnand %p968_p12, %p36_p13  ;;  %s1268_s22 = int_to_ptr.vmem [resolvable:$true] %s159_s22 }
  0x28   : > { %s1270_s25 = scalar_lea.sflag [#allocation3], %s148_s7  ;;  %s1042_s26 = scalar_lea.hbm %s1262_s17, 2048 }
  0x29   : > { %p1043_p5 = scmp.ne.s32.totalorder %s1262_s17, %s1042_s26  ;;  %p1044_p7 = pneg %p1264_p11 }
  0x2a   : > { %s1047_s4 = scalar_lea.hbm %s1712_s0, 4096  ;;  %p1048_p10 = scmp.lt.s32.totalorder %s1262_s17, %s1712_s0 }
  0x2b   : > { %p1045_p2 = pnand %p1044_p7, %p1043_p5  ;;  %p1049_p12 = scmp.lt.s32.totalorder %s1047_s4, %s1042_s26 }
  0x2d   : > { %p1046_p9 = pneg %p1045_p2  ;;  %p1050_p13 = por %p1049_p12, %p1048_p10 }
  0x2f   : > { %p1051_p0 = pnand %p1050_p13, %p1046_p9 }
  0x31   : > { %1054 = shalt.err (!%p1051_p0)
}
  0x32   : > { %s1055_s7 = scalar_lea.vmem %s1268_s22, 2048  ;;  %s1143_s10 = smov [#allocation2]  }
  0x33   : > { %p1056_p1 = scmp.ne.s32.totalorder %s1268_s22, %s1055_s7  ;;  %s1060_s11 = sshll.u32 %s1143_s10, 4  ;;  %s1061_s11 = int_to_ptr.vmem [resolvable:$false] %s1060_s11 }
  0x34   : > { %s1062_s21 = scalar_lea.vmem %s1061_s11, 4096  ;;  %p1063_p2 = scmp.lt.s32.totalorder %s1268_s22, %s1061_s11 }
  0x35   : > { %p1058_p6 = pnand %p1056_p1, %p1044_p7  ;;  %p1064_p3 = scmp.lt.s32.totalorder %s1062_s21, %s1055_s7 }
  0x37   : > { %p1059_p5 = pneg %p1058_p6  ;;  %p1065_p4 = por %p1064_p3, %p1063_p2 }
  0x39   : > { %p1066_p8 = pnand %p1065_p4, %p1059_p5 }
  0x3b   : > { %1069 = shalt.err (!%p1066_p8)
}
  0x3c   : > { %962 = dma.hbm_to_vmem [thread:$0]  (!%p1264_p11), %s1262_s17, 2048, %s1268_s22, %s1270_s25, %s1141_s28, %s1141_s28, %s1142_s29  }
  0x3d   : > { %p1727_p1 = scmp.ne.s32.totalorder %s1722_s20, 0 }
  0x3e   : > { %s1297_s26 = sand.u32 (!%p1727_p1), 1, %s1130_s13   ;;  %p1728_p4 = scmp.ne.s32.totalorder (!%p1727_p1), %s1720_s18, 0 }
  0x3f   : > { %171 = sbr.rel (%p1727_p1) target bundleno = 531 (0x213), region = 32  ;;  %s863_s27 = sshll.u32 (!%p1727_p1), %s1297_s26, 7 }
  0x40   : > { %s174_s30 = scalar_lea.sflag (!%p1727_p1), [#allocation3], %s1297_s26  ;;  %s1301_s4 = scalar_lea.vmem (!%p1727_p1), [#allocation2], %s863_s27 }
  0x44   : > { %1113 = dma.done.wait (%p1728_p4), %s174_s30, 2048  }
  0x45   : > { %1115 = vsyncadd (%p1728_p4), %s174_s30, 4294965248  ;;  %p1729_p6 = scmp.eq.s32.totalorder %s1196_s16, 0 }
  0x47   : > { %1117 = dma.done.wait (%p1729_p6), [#allocation6], 1152   ;;  %p1730_p8 = pmov %p1729_p6 }
  0x48   : > { %v1144_v0 = vmov 0.0   ;;  %s1145_s20 = smov 8   ;;  %s1146_s18 = smov 16   ;;  %v208_v3 = vld [vmem:[%s1301_s4 + $0x20] sm:$0xff]  ;;  %v207_v8 = vld [vmem:[%s1301_s4 + $0x18] sm:$0xff]  ;;  %vm252_vm0 = vcmask 1040384  }
  0x49   : > { %1119 = vsyncadd (%p1730_p8), [#allocation6], 4294966144  ;;  %v1312_v1 = vrot.slane %v1144_v0, 1  ;;  %v1317_v2 = vrot.slane %v1144_v0, 2  ;;  %v216_v4 = vld [vmem:[%s1301_s4 + $0x60] sm:$0xff]  ;;  %v215_v9 = vld [vmem:[%s1301_s4 + $0x58] sm:$0xff] }
  0x4a   : > { %v204_v5 = vld [vmem:[%s1301_s4] sm:$0xff]  ;;  %v224_v6 = vadd.f32 %v216_v4, %v208_v3  ;;  %v223_v11 = vadd.f32 %v215_v9, %v207_v8  ;;  %v205_v12 = vld [vmem:[%s1301_s4 + $0x8] sm:$0xff]  ;;  %vm284_vm1 = vcmask 1046528   ;;  %s1147_s28 = smov 24   ;;  %vm332_vm2 = vcmask 1045504   ;;  %v211_v47 = vld [vmem:[%s1301_s4 + $0x38] sm:$0xff] }
  0x4b   : > { %308 = vrot.lane.b32.xlu0 %v1312_v1, %s1145_s20  ;;  %v212_v7 = vld [vmem:[%s1301_s4 + $0x40] sm:$0xff]  ;;  %v213_v13 = vld [vmem:[%s1301_s4 + $0x48] sm:$0xff]  ;;  %v219_v48 = vld [vmem:[%s1301_s4 + $0x78] sm:$0xff]  ;;  %s1148_s29 = smov 32   ;;  %s1149_s17 = smov 40   ;;  %vm532_vm3 = vcmask 64512  }
  0x4c   : > { %v220_v10 = vadd.f32 %v212_v7, %v204_v5  ;;  %v240_v14 = vrot.slane %v224_v6, 7  ;;  %v239_v16 = vrot.slane %v223_v11, 7  ;;  %v221_v19 = vadd.f32 %v213_v13, %v205_v12  ;;  %v209_v37 = vld [vmem:[%s1301_s4 + $0x28] sm:$0xff]  ;;  %v206_v50 = vld [vmem:[%s1301_s4 + $0x10] sm:$0xff]  ;;  %s1150_s22 = smov 48   ;;  %s1151_s23 = smov 56  }
  0x4d   : > { %v217_v38 = vld [vmem:[%s1301_s4 + $0x68] sm:$0xff]  ;;  %v214_v51 = vld [vmem:[%s1301_s4 + $0x50] sm:$0xff]  ;;  %v227_v55 = vadd.f32 %v219_v48, %v211_v47  ;;  %s1152_s25 = smov 64   ;;  %vm541_vm4 = vcmask 130048   ;;  %vm550_vm5 = vcmask 195584   ;;  %vm559_vm6 = vcmask 261120  }
  0x4e   : > { %v236_v15 = vrot.slane %v220_v10, 7  ;;  %v1330_v17 = vsel %vm252_vm0, 0.0, %v240_v14  ;;  %v265_v18 = vsel %vm252_vm0, %v240_v14, 0.0  ;;  %v1339_v21 = vsel %vm252_vm0, 0.0, %v239_v16  ;;  %v210_v7 = vld [vmem:[%s1301_s4 + $0x30] sm:$0xff]  ;;  %v609_v48 = vld [vmem:[#allocation5 + $0x28] sm:$0xff] }
  0x4f   : > { %356 = vrot.lane.b32.xlu0 %v1317_v2, %s1146_s18  ;;  %389 = vrot.lane.b32.xlu1 %v1330_v17, %s1147_s28  ;;  %v264_v22 = vsel %vm252_vm0, %v239_v16, 0.0  ;;  %v296_v24 = vrot.slane %v1339_v21, 1  ;;  %v299_v30 = vrot.slane %v1330_v17, 1  ;;  %v300_v31 = vrot.slane %v265_v18, 1  ;;  %v218_v8 = vld [vmem:[%s1301_s4 + $0x70] sm:$0xff]  ;;  %s865_s8 = sshll.u32 %s1297_s26, 6 }
  0x50   : > { %v1336_v20 = vsel %vm252_vm0, 0.0, %v236_v15  ;;  %v261_v23 = vsel %vm252_vm0, %v236_v15, 0.0  ;;  %v297_v25 = vrot.slane %v264_v22, 1  ;;  %v344_v35 = vrot.slane %v1339_v21, 2  ;;  %v610_v47 = vld [vmem:[#allocation5 + $0x30] sm:$0xff]  ;;  %s203_s10 = scalar_lea.vmem [#allocation7], %s865_s8 }
  0x51   : > { %v287_v26 = vrot.slane %v1336_v20, 1  ;;  %v288_v27 = vrot.slane %v261_v23, 1  ;;  %v335_v28 = vrot.slane %v1336_v20, 2  ;;  %v336_v29 = vrot.slane %v261_v23, 2  ;;  %s772_s11 = sshll.u32 %s203_s10, 4  ;;  %s881_s21 = sshll.u32 %s1196_s16, 10  ;;  %s1663_s11 = int_to_ptr.vmem [resolvable:$true] %s772_s11 }
  0x52   : > { %v1350_v32 = vsel %vm284_vm1, %v296_v24, %v297_v25  ;;  %v1357_v34 = vsel %vm284_vm1, %v299_v30, %v300_v31  ;;  %v345_v36 = vrot.slane %v264_v22, 2  ;;  %v237_v40 = vrot.slane %v221_v19, 7  ;;  %s1668_s4 = scalar_lea.hbm %s1715_s3, %s881_s21  ;;  %p1731_p11 = scmp.ne.s32.totalorder %s1725_s6, 0 }
  0x53   : > { %381 = vrot.lane.b32.xlu0 %v1336_v20, %s1147_s28  ;;  %v289_v33 = vsel %vm284_vm1, %v287_v26, %v288_v27  ;;  %v337_v39 = vsel %vm332_vm2, %v335_v28, %v336_v29  ;;  %v225_v41 = vadd.f32 %v217_v38, %v209_v37  ;;  %v347_v43 = vrot.slane %v1330_v17, 2  ;;  %s1153_s16 = smov [#allocation7]  }
  0x54   : > { %310 = vrot.lane.b32.xlu1 %v289_v33, %s1145_s20  ;;  %v1367_v42 = vsel %vm332_vm2, %v344_v35, %v345_v36  ;;  %v348_v44 = vrot.slane %v265_v18, 2  ;;  %v1371_v45 = vsel %vm252_vm0, 0.0, %v237_v40  ;;  %v262_v46 = vsel %vm252_vm0, %v237_v40, 0.0 }
  0x55   : > { %v241_v49 = vrot.slane %v225_v41, 7  ;;  %v290_v53 = vrot.slane %v1371_v45, 1  ;;  %v291_v54 = vrot.slane %v262_v46, 1  ;;  %v222_v56 = vadd.f32 %v214_v51, %v206_v50  ;;  %v607_v50 = vld [vmem:[#allocation5 + $0x18] sm:$0xff]  ;;  %v606_v51 = vld [vmem:[#allocation5 + $0x10] sm:$0xff] }
  0x56   : > { %v1383_v52 = vsel %vm332_vm2, %v347_v43, %v348_v44  ;;  %v243_v57 = vrot.slane %v227_v55, 7  ;;  %v226_v13 = vadd.f32 %v218_v8, %v210_v7  ;;  %v338_v23 = vrot.slane %v1371_v45, 2  ;;  %v612_v44 = vld [vmem:[#allocation5 + $0x40] sm:$0xff] }
  0x57   : > { %316 = vrot.lane.b32.xlu0 %v1350_v32, %s1145_s20  ;;  %v1389_v58 = vsel %vm252_vm0, 0.0, %v241_v49  ;;  %v1393_v59 = vsel %vm284_vm1, %v290_v53, %v291_v54  ;;  %v266_v60 = vsel %vm252_vm0, %v241_v49, 0.0  ;;  %v238_v6 = vrot.slane %v222_v56, 7  ;;  %899 = vmatprep.subr.mxu0 %v612_v44  ;;  %v608_v49 = vld [vmem:[#allocation5 + $0x20] sm:$0xff]  ;;  %v605_v53 = vld [vmem:[#allocation5 + $0x8] sm:$0xff] }
  0x58   : > { %318 = vrot.lane.b32.xlu1 %v1357_v34, %s1145_s20  ;;  %v1397_v61 = vsel %vm252_vm0, 0.0, %v243_v57  ;;  %v268_v62 = vsel %vm252_vm0, %v243_v57, 0.0  ;;  %v302_v11 = vrot.slane %v1389_v58, 1  ;;  %v303_v12 = vrot.slane %v266_v60, 1  ;;  %900 = vmatpush3.msra.mxu0 %v612_v44  ;;  %v604_v54 = vld [vmem:[#allocation5] sm:$0xff] }
  0x59   : > { %v406_v63 = vrot.slane %v1397_v61, 1  ;;  %v407_v3 = vrot.slane %v268_v62, 1  ;;  %v433_v4 = vrot.slane %v1397_v61, 2  ;;  %v434_v5 = vrot.slane %v268_v62, 2  ;;  %929 = vmatprep.subr.mxu1 %v612_v44 }
  0x5a   : > { %v1416_v14 = vsel %vm252_vm0, 0.0, %v238_v6  ;;  %v263_v15 = vsel %vm252_vm0, %v238_v6, 0.0  ;;  %v1424_v16 = vsel %vm284_vm1, %v302_v11, %v303_v12  ;;  %v242_v22 = vrot.slane %v226_v13, 7  ;;  %938 = vmatpush3.msra.mxu1 %v612_v44 }
  0x5b   : > { %358 = vrot.lane.b32.xlu0 %v337_v39, %s1146_s18  ;;  %v1407_v9 = vsel %vm284_vm1, %v406_v63, %v407_v3  ;;  %v1410_v10 = vsel %vm332_vm2, %v433_v4, %v434_v5  ;;  %v293_v18 = vrot.slane %v1416_v14, 1  ;;  %v294_v19 = vrot.slane %v263_v15, 1 }
  0x5c   : > { %364 = vrot.lane.b32.xlu1 %v1367_v42, %s1146_s18  ;;  %v339_v25 = vrot.slane %v262_v46, 2  ;;  %v1435_v26 = vsel %vm252_vm0, 0.0, %v242_v22  ;;  %v267_v27 = vsel %vm252_vm0, %v242_v22, 0.0  ;;  %v351_v35 = vrot.slane %v266_v60, 2  ;;  %v611_v46 = vld [vmem:[#allocation5 + $0x38] sm:$0xff] }
  0x5d   : > { %v1432_v24 = vsel %vm284_vm1, %v293_v18, %v294_v19  ;;  %v305_v28 = vrot.slane %v1435_v26, 1  ;;  %v306_v29 = vrot.slane %v267_v27, 1  ;;  %v341_v37 = vrot.slane %v1416_v14, 2  ;;  %901 = vmatprep.subr.mxu0 %v611_v46  ;;  %930 = vmatprep.subr.mxu1 %v611_v46 }
  0x5e   : > { %v1444_v30 = vsel %vm332_vm2, %v338_v23, %v339_v25  ;;  %v342_v38 = vrot.slane %v263_v15, 2  ;;  %v353_v40 = vrot.slane %v1435_v26, 2  ;;  %v354_v41 = vrot.slane %v267_v27, 2  ;;  %902 = vmatpush3.msra.mxu0 %v611_v46  ;;  %939 = vmatpush3.msra.mxu1 %v611_v46 }
  0x5f   : > { %383 = vrot.lane.b32.xlu0 %v1371_v45, %s1147_s28  ;;  %v1451_v31 = vsel %vm284_vm1, %v305_v28, %v306_v29  ;;  %903 = vmatprep.subr.mxu0 %v610_v47  ;;  %vm568_vm7 = vcmask 326656   ;;  %vm577_vm8 = vcmask 392192   ;;  %vm586_vm9 = vcmask 457728  }
  0x60   : > { %366 = vrot.lane.b32.xlu1 %v1383_v52, %s1146_s18  ;;  %v1479_v43 = vsel %vm332_vm2, %v353_v40, %v354_v41  ;;  %904 = vmatpush3.msra.mxu0 %v610_v47  ;;  %vm595_vm10 = vcmask 523264   ;;  %vm620_vm11 = vcmask 588800  }
  0x61   : > { %905 = vmatprep.subr.mxu0 %v609_v48  ;;  %931 = vmatprep.subr.mxu1 %v610_v47 }
  0x62   : > { %906 = vmatpush3.msra.mxu0 %v609_v48  ;;  %940 = vmatpush3.msra.mxu1 %v610_v47 }
  0x63   : > { %409 = vrot.lane.b32.xlu0 %v289_v33, %s1148_s29  ;;  %v350_v33 = vrot.slane %v1389_v58, 2  ;;  %907 = vmatprep.subr.mxu0 %v608_v49 }
  0x64   : > { %391 = vrot.lane.b32.xlu1 %v1389_v58, %s1147_s28  ;;  %908 = vmatpush3.msra.mxu0 %v608_v49 }
  0x65   : > { %v1459_v36 = vsel %vm332_vm2, %v350_v33, %v351_v35  ;;  %909 = vmatprep.subr.mxu0 %v607_v50  ;;  %932 = vmatprep.subr.mxu1 %v609_v48 }
  0x66   : > { %910 = vmatpush3.msra.mxu0 %v607_v50  ;;  %941 = vmatpush3.msra.mxu1 %v609_v48 }
  0x67   : > { %312 = vrot.lane.b32.xlu0 %v1393_v59, %s1145_s20  ;;  %911 = vmatprep.subr.mxu0 %v606_v51 }
  0x68   : > { %417 = vrot.lane.b32.xlu1 %v1357_v34, %s1148_s29  ;;  %912 = vmatpush3.msra.mxu0 %v606_v51 }
  0x69   : > { %913 = vmatprep.subr.mxu0 %v605_v53  ;;  %933 = vmatprep.subr.mxu1 %v608_v49 }
  0x6a   : > { %914 = vmatpush3.msra.mxu0 %v605_v53  ;;  %942 = vmatpush3.msra.mxu1 %v608_v49 }
  0x6b   : > { %411 = vrot.lane.b32.xlu0 %v1393_v59, %s1148_s29  ;;  %915 = vmatprep.subr.mxu0 %v604_v54 }
  0x6c   : > { %320 = vrot.lane.b32.xlu1 %v1424_v16, %s1145_s20  ;;  %916 = vmatpush3.msra.mxu0 %v604_v54 }
  0x6d   : > { %934 = vmatprep.subr.mxu1 %v607_v50 }
  0x6e   : > { %943 = vmatpush3.msra.mxu1 %v607_v50 }
  0x6f   : > { %436 = vrot.lane.b32.xlu0 %v337_v39, %s1149_s17  ;;  %v1467_v39 = vsel %vm332_vm2, %v341_v37, %v342_v38  ;;  %935 = vmatprep.subr.mxu1 %v606_v51 }
  0x70   : > { %419 = vrot.lane.b32.xlu1 %v1424_v16, %s1148_s29  ;;  %944 = vmatpush3.msra.mxu1 %v606_v51 }
  0x71   : > { %936 = vmatprep.subr.mxu1 %v605_v53 }
  0x72   : > { %945 = vmatpush3.msra.mxu1 %v605_v53 }
  0x73   : > { %314 = vrot.lane.b32.xlu0 %v1432_v24, %s1145_s20  ;;  %937 = vmatprep.subr.mxu1 %v604_v54 }
  0x74   : > { %444 = vrot.lane.b32.xlu1 %v1383_v52, %s1149_s17  ;;  %946 = vmatpush3.msra.mxu1 %v604_v54 }
  0x77   : > { %360 = vrot.lane.b32.xlu0 %v1444_v30, %s1146_s18 }
  0x78   : > { %322 = vrot.lane.b32.xlu1 %v1451_v31, %s1145_s20 }
  0x7b   : > { %438 = vrot.lane.b32.xlu0 %v1444_v30, %s1149_s17 }
  0x7c   : > { %368 = vrot.lane.b32.xlu1 %v1459_v36, %s1146_s18 }
  0x7f   : > { %460 = vrot.lane.b32.xlu0 %v1371_v45, %s1150_s22 }
  0x80   : > { %446 = vrot.lane.b32.xlu1 %v1459_v36, %s1149_s17 }
  0x83   : > { %362 = vrot.lane.b32.xlu0 %v1467_v39, %s1146_s18 }
  0x84   : > { %468 = vrot.lane.b32.xlu1 %v1389_v58, %s1150_s22 }
  0x87   : > { %385 = vrot.lane.b32.xlu0 %v1416_v14, %s1147_s28 }
  0x88   : > { %370 = vrot.lane.b32.xlu1 %v1479_v43, %s1146_s18  ;;  %s759_s18 = scalar_lea.sflag [#allocation4], %s1297_s26 }
  0x8b   : > { %462 = vrot.lane.b32.xlu0 %v1416_v14, %s1150_s22 }
  0x8c   : > { %393 = vrot.lane.b32.xlu1 %v1435_v26, %s1147_s28 }
  0x8f   : > { %484 = vrot.lane.b32.xlu0 %v1393_v59, %s1151_s23 }
  0x90   : > { %470 = vrot.lane.b32.xlu1 %v1435_v26, %s1150_s22 }
  0x93   : > { %387 = vrot.lane.b32.xlu0 %v1339_v21, %s1147_s28 }
  0x94   : > { %492 = vrot.lane.b32.xlu1 %v1424_v16, %s1151_s23 }
  0x97   : > { %413 = vrot.lane.b32.xlu0 %v1432_v24, %s1148_s29 }
  0x98   : > { %395 = vrot.lane.b32.xlu1 %v1397_v61, %s1147_s28  ;;  %s1070_s28 = scalar_lea.vmem %s1663_s11, 1024 }
  0x99   : > { %p1071_p3 = scmp.ne.s32.totalorder %s1663_s11, %s1070_s28 }
  0x9b   : > { %486 = vrot.lane.b32.xlu0 %v1432_v24, %s1151_s23  ;;  %p1072_p7 = pnand %p1071_p3, %p1731_p11 }
  0x9c   : > { %421 = vrot.lane.b32.xlu1 %v1451_v31, %s1148_s29 }
  0x9d   : > { %p1073_p9 = pneg %p1072_p7 }
  0x9f   : > { %508 = vrot.lane.b32.xlu0 %v1444_v30, %s1152_s25 }
  0xa0   : > { %494 = vrot.lane.b32.xlu1 %v1451_v31, %s1151_s23 }
  0xa3   : > { %415 = vrot.lane.b32.xlu0 %v1350_v32, %s1148_s29 }
  0xa4   : > { %516 = vrot.lane.b32.xlu1 %v1459_v36, %s1152_s25 }
  0xa7   : > { %440 = vrot.lane.b32.xlu0 %v1467_v39, %s1149_s17 }
  0xa8   : > { %423 = vrot.lane.b32.xlu1 %v1407_v9, %s1148_s29  ;;  %s1074_s29 = sshll.u32 %s1153_s16, 4  ;;  %s1075_s29 = int_to_ptr.vmem [resolvable:$false] %s1074_s29 }
  0xa9   : > { %p1077_p10 = scmp.lt.s32.totalorder %s1663_s11, %s1075_s29 }
  0xab   : > { %510 = vrot.lane.b32.xlu0 %v1467_v39, %s1152_s25 }
  0xac   : > { %448 = vrot.lane.b32.xlu1 %v1479_v43, %s1149_s17 }
  0xaf   : > { %442 = vrot.lane.b32.xlu0 %v1367_v42, %s1149_s17 }
  0xb0   : > { %518 = vrot.lane.b32.xlu1 %v1479_v43, %s1152_s25 }
  0xb3   : > { %464 = vrot.lane.b32.xlu0 %v1339_v21, %s1150_s22 }
  0xb4   : > { %450 = vrot.lane.b32.xlu1 %v1410_v10, %s1149_s17  ;;  %s1076_s17 = scalar_lea.vmem %s1075_s29, 2048 }
  0xb5   : > { %p1078_p12 = scmp.lt.s32.totalorder %s1076_s17, %s1070_s28 }
  0xb7   : > { %466 = vrot.lane.b32.xlu0 %v1330_v17, %s1150_s22  ;;  %p1079_p13 = por %p1078_p12, %p1077_p10 }
  0xb8   : > { %472 = vrot.lane.b32.xlu1 %v1397_v61, %s1150_s22 }
  0xb9   : > { %p1080_p0 = pnand %p1079_p13, %p1073_p9 }
  0xbb   : > { %488 = vrot.lane.b32.xlu0 %v1350_v32, %s1151_s23 }
  0xbc   : > { %474 = vrot.lane.b32.xlu1 %v1144_v0, %s1150_s22 }
  0xbd   : > { %v309_v55 = vpop.permute.xlu0 %308 }
  0xbe   : > { %v533_v56 = vsel %vm532_vm3, 0.0, %v309_v55 }
  0xbf   : > { %490 = vrot.lane.b32.xlu0 %v1357_v34, %s1151_s23 }
  0xc0   : > { %496 = vrot.lane.b32.xlu1 %v1407_v9, %s1151_s23 }
  0xc1   : > { %v357_v57 = vpop.permute.xlu0 %356  ;;  %v390_v32 = vpop.permute.xlu1 %389 }
  0xc2   : > { %v542_v59 = vsel %vm541_vm4, %v533_v56, %v357_v57 }
  0xc3   : > { %512 = vrot.lane.b32.xlu0 %v1367_v42, %s1152_s25 }
  0xc4   : > { %498 = vrot.lane.b32.xlu1 %v1312_v1, %s1151_s23 }
  0xc5   : > { %v382_v60 = vpop.permute.xlu0 %381 }
  0xc6   : > { %v551_v61 = vsel %vm550_vm5, %v542_v59, %v382_v60  ;;  %v311_v0 = vpop.permute.xlu1 %310 }
  0xc7   : > { %514 = vrot.lane.b32.xlu0 %v1383_v52, %s1152_s25  ;;  %v534_v42 = vsel %vm532_vm3, %v1336_v20, %v311_v0 }
  0xc8   : > { %520 = vrot.lane.b32.xlu1 %v1410_v10, %s1152_s25 }
  0xc9   : > { %v317_v34 = vpop.permute.xlu0 %316 }
  0xca   : > { %v319_v62 = vpop.permute.xlu1 %318  ;;  %v537_v3 = vsel %vm532_vm3, %v1339_v21, %v317_v34 }
  0xcb   : > { %v538_v20 = vsel %vm532_vm3, %v1330_v17, %v319_v62 }
  0xcc   : > { %522 = vrot.lane.b32.xlu1 %v1317_v2, %s1152_s25 }
  0xcd   : > { %v359_v63 = vpop.permute.xlu0 %358 }
  0xce   : > { %v543_v4 = vsel %vm541_vm4, %v534_v42, %v359_v63  ;;  %v365_v1 = vpop.permute.xlu1 %364 }
  0xcf   : > { %v546_v5 = vsel %vm541_vm4, %v537_v3, %v365_v1 }
  0xd0   : > { %v555_v7 = vsel %vm550_vm5, %v546_v5, %v390_v32 }
  0xd1   : > { %v384_v52 = vpop.permute.xlu0 %383 }
  0xd2   : > { %v1559_v6 = vsel %vm550_vm5, %v543_v4, %v384_v52  ;;  %v367_v8 = vpop.permute.xlu1 %366 }
  0xd3   : > { %v547_v21 = vsel %vm541_vm4, %v538_v20, %v367_v8 }
  0xd5   : > { %v410_v9 = vpop.permute.xlu0 %409 }
  0xd6   : > { %v392_v10 = vpop.permute.xlu1 %391  ;;  %v560_v48 = vsel %vm559_vm6, %v551_v61, %v410_v9 }
  0xd7   : > { %v1566_v2 = vsel %vm550_vm5, %v547_v21, %v392_v10 }
  0xd9   : > { %v313_v11 = vpop.permute.xlu0 %312 }
  0xda   : > { %v418_v12 = vpop.permute.xlu1 %417  ;;  %v535_v17 = vsel %vm532_vm3, %v1371_v45, %v313_v11 }
  0xdb   : > { %v564_v57 = vsel %vm559_vm6, %v555_v7, %v418_v12 }
  0xdd   : > { %v412_v13 = vpop.permute.xlu0 %411 }
  0xde   : > { %v321_v15 = vpop.permute.xlu1 %320  ;;  %v561_v42 = vsel %vm559_vm6, %v1559_v6, %v412_v13 }
  0xdf   : > { %v539_v28 = vsel %vm532_vm3, %v1389_v58, %v321_v15 }
  0xe1   : > { %v437_v16 = vpop.permute.xlu0 %436 }
  0xe2   : > { %v420_v18 = vpop.permute.xlu1 %419  ;;  %v569_v49 = vsel %vm568_vm7, %v560_v48, %v437_v16 }
  0xe3   : > { %v565_v20 = vsel %vm559_vm6, %v1566_v2, %v420_v18 }
  0xe5   : > { %v1568_v19 = vpop.permute.xlu0 %314 }
  0xe6   : > { %v445_v22 = vpop.permute.xlu1 %444 }
  0xe7   : > { %v573_v32 = vsel %vm568_vm7, %v564_v57, %v445_v22 }
  0xe9   : > { %v361_v23 = vpop.permute.xlu0 %360 }
  0xea   : > { %v1573_v24 = vsel %vm541_vm4, %v535_v17, %v361_v23  ;;  %v1575_v25 = vpop.permute.xlu1 %322 }
  0xed   : > { %v439_v27 = vpop.permute.xlu0 %438 }
  0xee   : > { %v369_v29 = vpop.permute.xlu1 %368  ;;  %v570_v63 = vsel %vm568_vm7, %v561_v42, %v439_v27  ;;  %v536_v27 = vsel %vm532_vm3, %v1416_v14, %v1568_v19 }
  0xef   : > { %v1580_v31 = vsel %vm541_vm4, %v539_v28, %v369_v29 }
  0xf1   : > { %v461_v30 = vpop.permute.xlu0 %460 }
  0xf2   : > { %v447_v33 = vpop.permute.xlu1 %446  ;;  %v578_v50 = vsel %vm577_vm8, %v569_v49, %v461_v30 }
  0xf3   : > { %v574_v6 = vsel %vm568_vm7, %v565_v20, %v447_v33 }
  0xf5   : > { %v1582_v35 = vpop.permute.xlu0 %362 }
  0xf6   : > { %v469_v36 = vpop.permute.xlu1 %468  ;;  %v545_v29 = vsel %vm541_vm4, %v536_v27, %v1582_v35 }
  0xf7   : > { %v582_v60 = vsel %vm577_vm8, %v573_v32, %v469_v36 }
  0xf9   : > { %v386_v45 = vpop.permute.xlu0 %385 }
  0xfa   : > { %v1584_v37 = vpop.permute.xlu1 %370  ;;  %v553_v2 = vsel %vm550_vm5, %v1573_v24, %v386_v45 }
  0xfd   : > { %v463_v38 = vpop.permute.xlu0 %462 }
  0xfe   : > { %v1586_v39 = vpop.permute.xlu1 %393  ;;  %v579_v3 = vsel %vm577_vm8, %v570_v63, %v463_v38 }
  0xff   : > { %v557_v14 = vsel %vm550_vm5, %v1580_v31, %v1586_v39 }
 0x101   : > { %v485_v40 = vpop.permute.xlu0 %484 }
 0x102   : > { %v471_v41 = vpop.permute.xlu1 %470  ;;  %v587_v53 = vsel %vm586_vm9, %v578_v50, %v485_v40 }
 0x103   : > { %v583_v9 = vsel %vm577_vm8, %v574_v6, %v471_v41 }
 0x105   : > { %v388_v43 = vpop.permute.xlu0 %387 }
 0x106   : > { %v493_v44 = vpop.permute.xlu1 %492  ;;  %v554_v36 = vsel %vm550_vm5, %v545_v29, %v388_v43 }
 0x107   : > { %v591_v61 = vsel %vm586_vm9, %v582_v60, %v493_v44 }
 0x109   : > { %v414_v58 = vpop.permute.xlu0 %413 }
 0x10a   : > { %v1588_v46 = vpop.permute.xlu1 %395  ;;  %v562_v23 = vsel %vm559_vm6, %v553_v2, %v414_v58 }
 0x10d   : > { %v487_v47 = vpop.permute.xlu0 %486 }
 0x10e   : > { %v422_v51 = vpop.permute.xlu1 %421  ;;  %v588_v1 = vsel %vm586_vm9, %v579_v3, %v487_v47  ;;  %v540_v47 = vsel %vm532_vm3, %v1435_v26, %v1575_v25 }
 0x10f   : > { %v566_v43 = vsel %vm559_vm6, %v557_v14, %v422_v51  ;;  %v549_v31 = vsel %vm541_vm4, %v540_v47, %v1584_v37 }
 0x110   : > { %v558_v50 = vsel %vm550_vm5, %v549_v31, %v1588_v46  ;;  %v866_v46 = vld [vmem:[%s1714_s2] ss:$0 sm:$0xff] }
 0x111   : > { %v509_v54 = vpop.permute.xlu0 %508 }
 0x112   : > { %v596_v55 = vsel %vm595_vm10, %v587_v53, %v509_v54  ;;  %v495_v56 = vpop.permute.xlu1 %494 }
 0x113   : > { %917 = vmatprep.mubr.msk.f32.mxu0 %vm620_vm11, %v596_v55  ;;  %v592_v21 = vsel %vm586_vm9, %v583_v9, %v495_v56 }
 0x115   : > { %v416_v59 = vpop.permute.xlu0 %415 }
 0x116   : > { %v517_v0 = vpop.permute.xlu1 %516  ;;  %v563_v45 = vsel %vm559_vm6, %v554_v36, %v416_v59 }
 0x117   : > { %v600_v62 = vsel %vm595_vm10, %v591_v61, %v517_v0 }
 0x118   : > { %923 = vmatprep.mubr.msk.f32.mxu1 %vm620_vm11, %v600_v62 }
 0x119   : > { %v441_v34 = vpop.permute.xlu0 %440 }
 0x11a   : > { %v424_v4 = vpop.permute.xlu1 %423  ;;  %v571_v28 = vsel %vm568_vm7, %v562_v23, %v441_v34 }
 0x11b   : > { %v567_v26 = vsel %vm559_vm6, %v558_v50, %v424_v4 }
 0x11d   : > { %v511_v52 = vpop.permute.xlu0 %510 }
 0x11e   : > { %v597_v5 = vsel %vm595_vm10, %v588_v1, %v511_v52  ;;  %v449_v7 = vpop.permute.xlu1 %448 }
 0x11f   : > { %918 = vmatmul.mubr.msk.f32.vlgmr.msra.gmra.mxu0 %vm620_vm11, %v597_v5  ;;  %v575_v48 = vsel %vm568_vm7, %v566_v43, %v449_v7 }
 0x121   : > { %v443_v8 = vpop.permute.xlu0 %442 }
 0x122   : > { %v519_v10 = vpop.permute.xlu1 %518  ;;  %v572_v41 = vsel %vm568_vm7, %v563_v45, %v443_v8 }
 0x123   : > { %v601_v12 = vsel %vm595_vm10, %v592_v21, %v519_v10 }
 0x124   : > { %924 = vmatmul.mubr.msk.f32.vlgmr.msra.gmra.mxu1 %vm620_vm11, %v601_v12 }
 0x125   : > { %v465_v11 = vpop.permute.xlu0 %464 }
 0x126   : > { %v451_v13 = vpop.permute.xlu1 %450  ;;  %v580_v30 = vsel %vm577_vm8, %v571_v28, %v465_v11 }
 0x127   : > { %v576_v54 = vsel %vm568_vm7, %v567_v26, %v451_v13 }
 0x129   : > { %v467_v15 = vpop.permute.xlu0 %466 }
 0x12a   : > { %v473_v16 = vpop.permute.xlu1 %472  ;;  %v581_v19 = vsel %vm577_vm8, %v572_v41, %v467_v15 }
 0x12b   : > { %v584_v39 = vsel %vm577_vm8, %v575_v48, %v473_v16 }
 0x12d   : > { %v489_v22 = vpop.permute.xlu0 %488 }
 0x12e   : > { %v475_v17 = vpop.permute.xlu1 %474  ;;  %v589_v38 = vsel %vm586_vm9, %v580_v30, %v489_v22 }
 0x12f   : > { %v585_v37 = vsel %vm577_vm8, %v576_v54, %v475_v17 }
 0x131   : > { %v491_v18 = vpop.permute.xlu0 %490 }
 0x132   : > { %v497_v33 = vpop.permute.xlu1 %496  ;;  %v590_v44 = vsel %vm586_vm9, %v581_v19, %v491_v18 }
 0x133   : > { %v593_v51 = vsel %vm586_vm9, %v584_v39, %v497_v33 }
 0x135   : > { %v513_v24 = vpop.permute.xlu0 %512 }
 0x136   : > { %v598_v40 = vsel %vm595_vm10, %v589_v38, %v513_v24  ;;  %v499_v35 = vpop.permute.xlu1 %498 }
 0x137   : > { %920 = vmatprep.mubr.msk.f32.mxu0 %vm620_vm11, %v598_v40  ;;  %v594_v55 = vsel %vm586_vm9, %v585_v37, %v499_v35 }
 0x139   : > { %v515_v58 = vpop.permute.xlu0 %514 }
 0x13a   : > { %v599_v49 = vsel %vm595_vm10, %v590_v44, %v515_v58  ;;  %v521_v53 = vpop.permute.xlu1 %520 }
 0x13b   : > { %921 = vmatmul.mubr.msk.f32.gmra.mxu0 %vm620_vm11, %v599_v49  ;;  %v602_v25 = vsel %vm595_vm10, %v593_v51, %v521_v53 }
 0x13c   : > { %926 = vmatprep.mubr.msk.f32.mxu1 %vm620_vm11, %v602_v25 }
 0x13e   : > { %v523_v56 = vpop.permute.xlu1 %522 }
 0x13f   : > { %v603_v57 = vsel %vm595_vm10, %v594_v55, %v523_v56 }
 0x140   : > { %927 = vmatmul.mubr.msk.f32.gmra.mxu1 %vm620_vm11, %v603_v57 }
 0x1df   : > { %v919_v59 = vpop.f32.mrf.mxu0 }
 0x1e0   : > { %v717_v32 = vadd.f32 %v919_v59, %v866_v46 }
 0x1e1   : > { %v711_v60 = vpop.f32.mrf.mxu0 }
 0x1e2   : > { %751 = vst [vmem:[%s203_s10 + $0x8] sm:$0xff] %v717_v32  ;;  %v712_v61 = vadd.f32 %v866_v46, %v711_v60 }
 0x1e4   : > { %750 = vst [vmem:[%s203_s10] sm:$0xff] %v712_v61  ;;  %v925_v0 = vpop.f32.mrf.mxu1 }
 0x1e5   : > { %v737_v34 = vadd.f32 %v925_v0, %v866_v46 }
 0x1e6   : > { %v731_v62 = vpop.f32.mrf.mxu1 }
 0x1e7   : > { %755 = vst [vmem:[%s203_s10 + $0x28] sm:$0xff] %v737_v34  ;;  %v732_v42 = vadd.f32 %v866_v46, %v731_v62 }
 0x1e9   : > { %754 = vst [vmem:[%s203_s10 + $0x20] sm:$0xff] %v732_v42 }
 0x1fb   : > { %v922_v63 = vpop.f32.mrf.mxu0 }
 0x1fc   : > { %v727_v3 = vadd.f32 %v922_v63, %v866_v46 }
 0x1fd   : > { %v721_v4 = vpop.f32.mrf.mxu0 }
 0x1fe   : > { %753 = vst [vmem:[%s203_s10 + $0x18] sm:$0xff] %v727_v3  ;;  %v722_v1 = vadd.f32 %v866_v46, %v721_v4 }
 0x200   : > { %752 = vst [vmem:[%s203_s10 + $0x10] sm:$0xff] %v722_v1  ;;  %v928_v52 = vpop.f32.mrf.mxu1 }
 0x201   : > { %v747_v5 = vadd.f32 %v928_v52, %v866_v46 }
 0x202   : > { %v741_v7 = vpop.f32.mrf.mxu1 }
 0x203   : > { %757 = vst [vmem:[%s203_s10 + $0x38] sm:$0xff] %v747_v5  ;;  %v742_v20 = vadd.f32 %v866_v46, %v741_v7 }
 0x205   : > { %756 = vst [vmem:[%s203_s10 + $0x30] sm:$0xff] %v742_v20 }
 0x206   : > { %1083 = shalt.err (!%p1080_p0)
}
 0x207   : > { %s1084_s22 = scalar_lea.hbm %s1668_s4, 1024  ;;  %s1088_s8 = scalar_lea.hbm %s1715_s3, 2048 }
 0x208   : > { %p1085_p5 = scmp.ne.s32.totalorder %s1668_s4, %s1084_s22  ;;  %p1089_p4 = scmp.lt.s32.totalorder %s1668_s4, %s1715_s3 }
 0x209   : > { %p1090_p6 = scmp.lt.s32.totalorder %s1088_s8, %s1084_s22 }
 0x20a   : > { %p1086_p2 = pnand %p1085_p5, %p1731_p11 }
 0x20b   : > { %p1091_p8 = por %p1090_p6, %p1089_p4 }
 0x20c   : > { %p1087_p1 = pneg %p1086_p2 }
 0x20e   : > { %p1092_p3 = pnand %p1091_p8, %p1087_p1 }
 0x210   : > { %1095 = shalt.err (!%p1092_p3)
}
 0x211   : > { %s1154_s10 = smov 128  }
 0x212   : > { %953 = dma.vmem_to_hbm [thread:$0]  (%p1731_p11), %s1663_s11, 1024, %s1668_s4, %s759_s18, %s1154_s10, %s1154_s10, %s1145_s20  }
 0x213 PF: > { %s787_s21 = sand.u32 1, %s1126_s12   ;;  %p1732_p7 = scmp.ne.s32.totalorder %s1721_s19, 0 }
 0x214   : > { %p1733_p9 = scmp.ge.s32.totalorder %s1138_s15, 2  ;;  %s788_s27 = scalar_lea.sflag [#allocation4], %s787_s21 }
 0x216   : > { %p964_p10 = pnand %p1733_p9, %p1732_p7 }
 0x218   : > { %p965_p12 = pneg %p964_p10 }
 0x21a   : > { %1121 = dma.done.wait (%p965_p12), %s788_s27, 1024  }
 0x21b   : > { %1123 = vsyncadd (%p965_p12), %s788_s27, 4294966272  ;;  %p17_p13 = scmp.ge.s32.totalorder %s1229_s24, 4   ;;  %s1734_s12 = smov %s1130_s13 }
 0x21c   : > { %s1735_s13 = smov %s1134_s14  ;;  %s1736_s14 = smov %s1249_s5 }
 0x21d   : > { %s1737_s15 = smov %s1229_s24  ;;  %19 = sbr.rel (!%p17_p13) target bundleno = 6 (0x6), region = 81 }
 0x222   :  { %793 = vsyncpa [#allocation3], 1 }
 0x223   :  { %795 = vsyncpa [#allocation3 + $0x1], 1 }
 0x224   :  { %796 = vsyncpa [#allocation6], 1 }
 0x225   :  { %797 = vsyncpa [#allocation4], 1 }
 0x226   :  { %799 = vsyncpa [#allocation4 + $0x1], 1 }

</bundles_post_ra>
